<compile_context>
chip_gen: v5e
topology: v5e:2x2
jax: 0.10.0
libtpu: 0.0.40
codegen_flags: <defaults>
</compile_context>

<pallas_src>
import functools

import jax
import jax.numpy as jnp
from jax.experimental import pallas as pl
from jax.experimental.pallas import tpu as pltpu


def _dropout_kernel(seed_ref, x_ref, o_ref, *, threshold, scale):
    rows, cols = x_ref.shape

    # Global flat element index of every element in this tile.
    row_in_tile = jax.lax.broadcasted_iota(jnp.int32, (rows, cols), 0)
    col_in_tile = jax.lax.broadcasted_iota(jnp.int32, (rows, cols), 1)
    tile_row0 = pl.program_id(0) * rows
    idx = ((tile_row0 + row_in_tile) * cols + col_in_tile).astype(jnp.uint32)

    # Mix the user seed in, then a lowbias32-style avalanche hash -> uniform
    # 32-bit words.  Pure integer VPU work; no EUP / float conversions.
    key = (seed_ref[0].astype(jnp.uint32) * jnp.uint32(0x9E3779B1)
           + jnp.uint32(0x85EBCA6B))
    h = idx ^ key
    h = h ^ (h >> 16)
    h = h * jnp.uint32(0x7FEB352D)
    h = h ^ (h >> 15)
    h = h * jnp.uint32(0x846CA68B)
    h = h ^ (h >> 16)

    # Drop iff h < round(p * 2^32)  =>  keep probability = 1 - p.
    keep = h >= jnp.uint32(threshold)
    o_ref[...] = jnp.where(
        keep,
        x_ref[...].astype(jnp.float32) * jnp.float32(scale),
        jnp.float32(0.0),
    ).astype(o_ref.dtype)


def p3_dropout(x, p=0.5, *, seed=0, training=True):
    """Pallas implementation of P3Dropout.forward."""
    if not training or p == 0.0:
        return x                                   # identity in eval mode
    if p >= 1.0:
        return jnp.zeros_like(x)

    orig_shape = x.shape
    orig_dtype = x.dtype
    flat = x.reshape(-1)
    n = flat.size

    WIDTH = 1024                                   # lane-dense slab width (8 * 128)
    padded = pl.cdiv(n, WIDTH) * WIDTH
    if padded != n:
        # TODO(synk): handle ragged tails with an in-kernel masked store instead
        # of this pad + slice round trip (extra HBM copies for odd sizes).
        flat = jnp.pad(flat, (0, padded - n))
    rows = padded // WIDTH
    x2d = flat.reshape(rows, WIDTH)

    # ~512 KiB blocks: big enough to sit near the HBM roofline, small enough
    # that double-buffered in+out tiles are tiny vs. VMEM on v5e/v6e/v7x.
    itemsize = x.dtype.itemsize
    target_rows = max(8, (512 * 1024) // (WIDTH * itemsize))
    target_rows = (target_rows // 8) * 8
    block_rows = min(rows, target_rows)
    grid = (pl.cdiv(rows, block_rows),)

    threshold = min(int(round(float(p) * (1 << 32))), (1 << 32) - 1)
    scale = 1.0 / (1.0 - float(p))
    seed_arr = jnp.asarray([seed], dtype=jnp.int32)

    kernel = functools.partial(_dropout_kernel, threshold=threshold, scale=scale)

    out2d = pl.pallas_call(
        kernel,
        out_shape=jax.ShapeDtypeStruct(x2d.shape, orig_dtype),
        grid_spec=pltpu.PrefetchScalarGridSpec(
            num_scalar_prefetch=1,                 # seed lands in SMEM
            grid=grid,
            in_specs=[pl.BlockSpec((block_rows, WIDTH), lambda i, seed: (i, 0))],
            out_specs=pl.BlockSpec((block_rows, WIDTH), lambda i, seed: (i, 0)),
        ),
        compiler_params=pltpu.CompilerParams(
            dimension_semantics=("parallel",),     # independent tiles -> megacore
        ),
        cost_estimate=pl.CostEstimate(
            flops=10 * n,
            transcendentals=0,
            bytes_accessed=2 * n * itemsize,       # pure streaming read + write
        ),
    )(seed_arr, x2d)

    out_flat = out2d.reshape(-1)
    if padded != n:
        out_flat = out_flat[:n]
    return out_flat.reshape(orig_shape)


if __name__ == "__main__":
    key = jax.random.PRNGKey(0)
    x = jax.random.normal(key, (2, 4, 16, 16), dtype=jnp.float32)

    p = 0.5
    out = jax.block_until_ready(p3_dropout(x, p=p, seed=1234, training=True))

    # Shape/dtype preserved; surviving elements scaled by 1/(1-p).
    assert out.shape == x.shape and out.dtype == x.dtype
    kept = out != 0.0
    scale = 1.0 / (1.0 - p)
    assert jnp.allclose(out[kept], x[kept] * scale, rtol=1e-6, atol=1e-6)
    # Keep fraction should be roughly 1 - p.
    frac_kept = float(jnp.mean(kept.astype(jnp.float32)))
    assert 0.3 < frac_kept < 0.7, frac_kept
    # Eval mode is identity.
    out_eval = jax.block_until_ready(p3_dropout(x, p=p, training=False))
    assert jnp.array_equal(out_eval, x)

    print("KERNEL_OK")
</pallas_src>

<mosaic_0001>
module attributes {stable_mosaic.version = 11 : i64} {
  func.func @_dropout_kernel(%arg0: i32, %arg1: memref<1xi32, #tpu.memory_space<smem>>, %arg2: memref<2x1024xf32, #tpu.memory_space<vmem>>, %arg3: memref<2x1024xf32, #tpu.memory_space<vmem>>) attributes {dimension_semantics = [#tpu.dimension_semantics<parallel>], iteration_bounds = array<i64: 1>, scalar_prefetch = 1 : i64, scratch_operands = 0 : i64, tpu.core_type = #tpu.core_type<tc>, window_params = [{transform_indices = @transform_0, window_bounds = array<i64: 2, 1024>}, {transform_indices = @transform_1, window_bounds = array<i64: 2, 1024>}]} {
    %0 = tpu.iota {dimensions = array<i32: 0>} : vector<2x1024xi32>
    %1 = tpu.iota {dimensions = array<i32: 1>} : vector<2x1024xi32>
    %c2_i32 = arith.constant 2 : i32
    %2 = arith.muli %arg0, %c2_i32 : i32
    %3 = vector.broadcast %2 : i32 to vector<2x1024xi32>
    %4 = arith.addi %3, %0 : vector<2x1024xi32>
    %c1024_i32 = arith.constant 1024 : i32
    %5 = vector.broadcast %c1024_i32 : i32 to vector<2x1024xi32>
    %6 = arith.muli %4, %5 : vector<2x1024xi32>
    %7 = arith.addi %6, %1 : vector<2x1024xi32>
    %c0 = arith.constant 0 : index
    %8 = memref.load %arg1[%c0] : memref<1xi32, #tpu.memory_space<smem>>
    %c-1640531535_i32 = arith.constant -1640531535 : i32
    %9 = arith.muli %8, %c-1640531535_i32 : i32
    %c-2048144789_i32 = arith.constant -2048144789 : i32
    %10 = arith.addi %9, %c-2048144789_i32 : i32
    %11 = vector.broadcast %10 : i32 to vector<2x1024xi32>
    %12 = arith.xori %7, %11 : vector<2x1024xi32>
    %c16_i32 = arith.constant 16 : i32
    %13 = vector.broadcast %c16_i32 : i32 to vector<2x1024xi32>
    %14 = arith.shrui %12, %13 : vector<2x1024xi32>
    %15 = arith.xori %12, %14 : vector<2x1024xi32>
    %c2146121005_i32 = arith.constant 2146121005 : i32
    %16 = vector.broadcast %c2146121005_i32 : i32 to vector<2x1024xi32>
    %17 = arith.muli %15, %16 : vector<2x1024xi32>
    %c15_i32 = arith.constant 15 : i32
    %18 = vector.broadcast %c15_i32 : i32 to vector<2x1024xi32>
    %19 = arith.shrui %17, %18 : vector<2x1024xi32>
    %20 = arith.xori %17, %19 : vector<2x1024xi32>
    %c-2073254261_i32 = arith.constant -2073254261 : i32
    %21 = vector.broadcast %c-2073254261_i32 : i32 to vector<2x1024xi32>
    %22 = arith.muli %20, %21 : vector<2x1024xi32>
    %c16_i32_0 = arith.constant 16 : i32
    %23 = vector.broadcast %c16_i32_0 : i32 to vector<2x1024xi32>
    %24 = arith.shrui %22, %23 : vector<2x1024xi32>
    %25 = arith.xori %22, %24 : vector<2x1024xi32>
    %c-2147483648_i32 = arith.constant -2147483648 : i32
    %26 = vector.broadcast %c-2147483648_i32 : i32 to vector<2x1024xi32>
    %27 = arith.cmpi uge, %25, %26 : vector<2x1024xi32>
    %c0_1 = arith.constant 0 : index
    %c0_2 = arith.constant 0 : index
    %28 = vector.load %arg2[%c0_1, %c0_2] : memref<2x1024xf32, #tpu.memory_space<vmem>>, vector<2x1024xf32>
    %cst = arith.constant 2.000000e+00 : f32
    %29 = vector.broadcast %cst : f32 to vector<2x1024xf32>
    %30 = arith.mulf %28, %29 : vector<2x1024xf32>
    %cst_3 = arith.constant 0.000000e+00 : f32
    %31 = vector.broadcast %cst_3 : f32 to vector<2x1024xf32>
    %32 = arith.select %27, %30, %31 : vector<2x1024xi1>, vector<2x1024xf32>
    %c0_4 = arith.constant 0 : index
    %c0_5 = arith.constant 0 : index
    %33 = vector.load %arg3[%c0_4, %c0_5] : memref<2x1024xf32, #tpu.memory_space<vmem>>, vector<2x1024xf32>
    tpu.vector_store %arg3[%c0_4, %c0_5], %32 {strides = array<i32>} : memref<2x1024xf32, #tpu.memory_space<vmem>>, vector<2x1024xf32>,
    return
  }
  func.func @transform_0(%arg0: i32, %arg1: memref<1xi32, #tpu.memory_space<smem>>) -> (i32, i32) {
    %c0_i32 = arith.constant 0 : i32
    %c0_i32_0 = arith.constant 0 : i32
    return %arg0, %c0_i32 : i32, i32
  }
  func.func @transform_1(%arg0: i32, %arg1: memref<1xi32, #tpu.memory_space<smem>>) -> (i32, i32) {
    %c0_i32 = arith.constant 0 : i32
    %c0_i32_0 = arith.constant 0 : i32
    return %arg0, %c0_i32 : i32, i32
  }
}

</mosaic_0001>

<bundles_post_ra>
// kernel: tpu_custom_call.1
= control target key start
LH: loop header
LB: loop body
LE: loop exit
PB: predicated region body
PF: predicated region fallthrough
CT: control target
= control target key end

     0   :  { %8 = vsyncpa [#allocation5], 0  ;;  %s331_s0 = inlined_call_operand.<no memory space> [shape: s32[1], index: 0, kind: input, shape index: {}]   ;;  %s332_s1 = inlined_call_operand.hbm [shape: f32[2,1024], index: 1, kind: input, shape index: {}]   ;;  %s333_s2 = inlined_call_operand.hbm [shape: f32[2,1024], index: 2, kind: output, shape index: {}]  }
   0x1   :  { %9 = vsyncpa [#allocation6], 0  ;;  %s15_s11 = sshll.u32 %s332_s1, 4  ;;  %s287_s12 = smov [#allocation4]   ;;  %s16_s11 = int_to_ptr.hbm [resolvable:$true] %s15_s11 }
   0x2   :  { %s17_s13 = sshll.u32 %s287_s12, 4  ;;  %s18_s13 = int_to_ptr.vmem [resolvable:$true] %s17_s13 }
   0x3   :  { %20 = dma.hbm_to_vmem [thread:$0]  %s16_s11, 256, %s18_s13, [#allocation5]  }
   0x4   :  { %283 = dma.done.wait [#allocation5], 256  }
   0x5   :  { %284 = vsyncadd [#allocation5], 4294967040  ;;  %v25_v0 = vlaneseq  ;;  %s49_s16 = smul.u32 2654435761, %s331_s0  ;;  %v148_v16 = vld [vmem:[#allocation4] sm:$0xff]  ;;  %v149_v17 = vld [vmem:[#allocation4 + $0x8] sm:$0xff] }
   0x6   :  { %v150_v22 = vmul.f32 2.0, %v148_v16  ;;  %v151_v23 = vmul.f32 2.0, %v149_v17  ;;  %vm195_vm0 = vcmask 1041408   ;;  %vm197_vm1 = vcmask 1045508   ;;  %s288_s0 = smov [#allocation7]   ;;  %s215_s20 = sshll.u32 %s333_s2, 4  ;;  %s216_s20 = int_to_ptr.hbm [resolvable:$true] %s215_s20 }
   0x7   :  { %v26_v1 = vshrl.u32 %v25_v0, 7  ;;  %v28_v2 = vand.u32 127, %v25_v0  ;;  %s50_s17 = sadd.s32 2246822507, %s49_s16  ;;  %vm199_vm4 = vcmask 1043456   ;;  %s213_s1 = sshll.u32 %s288_s0, 4  ;;  %s214_s1 = int_to_ptr.vmem [resolvable:$true] %s213_s1 }
   0x8   :  { %v51_v3 = vstv %s50_s17  ;;  %154 = vst [vmem:[#allocation1] ss:$4 sm:$0xff] %v150_v22 }
   0x9   :  { %v29_v4 = vadd.s32 128, %v28_v2  ;;  %v30_v5 = vadd.s32 256, %v28_v2  ;;  %v31_v6 = vadd.s32 384, %v28_v2  ;;  %v39_v7 = vmul.u32 1024, %v26_v1  ;;  %156 = vst [vmem:[#allocation1 + $0x20] ss:$4 sm:$0xff] %v151_v23 }
   0xa   :  { %v32_v8 = vadd.s32 512, %v28_v2  ;;  %v33_v9 = vadd.s32 640, %v28_v2  ;;  %v34_v10 = vadd.s32 768, %v28_v2  ;;  %v35_v11 = vadd.s32 896, %v28_v2 }
   0xb   :  { %v40_v12 = vadd.s32 %v39_v7, %v28_v2  ;;  %v41_v13 = vadd.s32 %v39_v7, %v29_v4  ;;  %v42_v14 = vadd.s32 %v39_v7, %v30_v5  ;;  %v43_v15 = vadd.s32 %v39_v7, %v31_v6 }
   0xc   :  { %v44_v18 = vadd.s32 %v39_v7, %v32_v8  ;;  %v45_v19 = vadd.s32 %v39_v7, %v33_v9  ;;  %v46_v20 = vadd.s32 %v39_v7, %v34_v10  ;;  %v47_v21 = vadd.s32 %v39_v7, %v35_v11 }
   0xd   :  { %v52_v24 = vxor.u32 %v51_v3, %v40_v12  ;;  %v53_v25 = vxor.u32 %v51_v3, %v41_v13  ;;  %v54_v26 = vxor.u32 %v51_v3, %v42_v14  ;;  %v55_v27 = vxor.u32 %v51_v3, %v43_v15 }
   0xe   :  { %v56_v28 = vxor.u32 %v51_v3, %v44_v18  ;;  %v57_v29 = vxor.u32 %v51_v3, %v45_v19  ;;  %v58_v32 = vxor.u32 %v51_v3, %v46_v20  ;;  %v59_v33 = vxor.u32 %v51_v3, %v47_v21 }
   0xf   :  { %v60_v30 = vshrl.u32 %v52_v24, 16  ;;  %v61_v31 = vshrl.u32 %v53_v25, 16  ;;  %v62_v34 = vshrl.u32 %v54_v26, 16  ;;  %v63_v35 = vshrl.u32 %v55_v27, 16 }
  0x10   :  { %v64_v36 = vshrl.u32 %v56_v28, 16  ;;  %v65_v37 = vshrl.u32 %v57_v29, 16  ;;  %v66_v40 = vshrl.u32 %v58_v32, 16  ;;  %v67_v41 = vshrl.u32 %v59_v33, 16 }
  0x11   :  { %v68_v38 = vxor.u32 %v60_v30, %v52_v24  ;;  %v69_v39 = vxor.u32 %v61_v31, %v53_v25  ;;  %v70_v42 = vxor.u32 %v62_v34, %v54_v26  ;;  %v71_v43 = vxor.u32 %v63_v35, %v55_v27  ;;  %v158_v24 = vld.sshfl [vmem:[#allocation1 + $0x8] sm:$0xff pattern:$0x73625140]  ;;  %v160_v34 = vld.sshfl [vmem:[#allocation1 + $0x18] sm:$0xff pattern:$0x73625140] }
  0x12   :  { %v72_v44 = vxor.u32 %v64_v36, %v56_v28  ;;  %v73_v45 = vxor.u32 %v65_v37, %v57_v29  ;;  %v74_v48 = vxor.u32 %v66_v40, %v58_v32  ;;  %v75_v51 = vxor.u32 %v67_v41, %v59_v33  ;;  %v159_v29 = vld.sshfl [vmem:[#allocation1 + $0x10] sm:$0xff pattern:$0x73625140] }
  0x13   :  { %v76_v46 = vmul.u32 2146121005, %v68_v38  ;;  %v77_v47 = vmul.u32 2146121005, %v69_v39  ;;  %v78_v49 = vmul.u32 2146121005, %v70_v42 }
  0x14   :  { %v79_v50 = vmul.u32 2146121005, %v71_v43  ;;  %v80_v52 = vmul.u32 2146121005, %v72_v44  ;;  %v81_v55 = vmul.u32 2146121005, %v73_v45 }
  0x15   :  { %v84_v53 = vshrl.u32 %v76_v46, 15  ;;  %v85_v54 = vshrl.u32 %v77_v47, 15  ;;  %v82_v56 = vmul.u32 2146121005, %v74_v48  ;;  %v86_v57 = vshrl.u32 %v78_v49, 15 }
  0x16   :  { %v87_v58 = vshrl.u32 %v79_v50, 15  ;;  %v88_v59 = vshrl.u32 %v80_v52, 15  ;;  %v83_v0 = vmul.u32 2146121005, %v75_v51  ;;  %v89_v1 = vshrl.u32 %v81_v55, 15 }
  0x17   :  { %v92_v60 = vxor.u32 %v84_v53, %v76_v46  ;;  %v93_v61 = vxor.u32 %v85_v54, %v77_v47  ;;  %v94_v62 = vxor.u32 %v86_v57, %v78_v49  ;;  %v90_v4 = vshrl.u32 %v82_v56, 15  ;;  %v157_v38 = vld.sshfl [vmem:[#allocation1] sm:$0xff pattern:$0x73625140] }
  0x18   :  { %v95_v63 = vxor.u32 %v87_v58, %v79_v50  ;;  %v96_v5 = vxor.u32 %v88_v59, %v80_v52  ;;  %v91_v8 = vshrl.u32 %v83_v0, 15  ;;  %v97_v9 = vxor.u32 %v89_v1, %v81_v55  ;;  %v162_v42 = vld.sshfl [vmem:[#allocation1 + $0x28] sm:$0xff pattern:$0x73625140] }
  0x19   :  { %v100_v2 = vmul.u32 2221713035, %v92_v60  ;;  %v101_v3 = vmul.u32 2221713035, %v93_v61  ;;  %v102_v6 = vmul.u32 2221713035, %v94_v62  ;;  %v98_v12 = vxor.u32 %v90_v4, %v82_v56 }
  0x1a   :  { %v103_v7 = vmul.u32 2221713035, %v95_v63  ;;  %v104_v13 = vmul.u32 2221713035, %v96_v5  ;;  %v99_v16 = vxor.u32 %v91_v8, %v83_v0  ;;  %v105_v17 = vmul.u32 2221713035, %v97_v9 }
  0x1b   :  { %v108_v10 = vshrl.u32 %v100_v2, 16  ;;  %v109_v11 = vshrl.u32 %v101_v3, 16  ;;  %v110_v14 = vshrl.u32 %v102_v6, 16  ;;  %v106_v20 = vmul.u32 2221713035, %v98_v12 }
  0x1c   :  { %v111_v15 = vshrl.u32 %v103_v7, 16  ;;  %v112_v21 = vshrl.u32 %v104_v13, 16  ;;  %v107_v25 = vmul.u32 2221713035, %v99_v16  ;;  %v113_v26 = vshrl.u32 %v105_v17, 16 }
  0x1d   :  { %v116_v18 = vxor.u32 %v108_v10, %v100_v2  ;;  %v117_v19 = vxor.u32 %v109_v11, %v101_v3  ;;  %v118_v22 = vxor.u32 %v110_v14, %v102_v6  ;;  %v114_v30 = vshrl.u32 %v106_v20, 16  ;;  %v163_v47 = vld.sshfl [vmem:[#allocation1 + $0x30] sm:$0xff pattern:$0x73625140] }
  0x1e   :  { %v119_v23 = vxor.u32 %v111_v15, %v103_v7  ;;  %v120_v31 = vxor.u32 %v112_v21, %v104_v13  ;;  %v115_v35 = vshrl.u32 %v107_v25, 16  ;;  %v121_v36 = vxor.u32 %v113_v26, %v105_v17  ;;  %v164_v55 = vld.sshfl [vmem:[#allocation1 + $0x38] sm:$0xff pattern:$0x73625140] }
  0x1f   :  { %v225_v27 = vxor.u32 2147483648, %v116_v18  ;;  %v226_v28 = vxor.u32 2147483648, %v117_v19  ;;  %v227_v32 = vxor.u32 2147483648, %v118_v22  ;;  %v122_v39 = vxor.u32 %v114_v30, %v106_v20  ;;  %v161_v58 = vld.sshfl [vmem:[#allocation1 + $0x20] sm:$0xff pattern:$0x73625140] }
  0x20   :  { %v228_v33 = vxor.u32 2147483648, %v119_v23  ;;  %v229_v41 = vxor.u32 2147483648, %v120_v31  ;;  %v123_v46 = vxor.u32 %v115_v35, %v107_v25  ;;  %v230_v51 = vxor.u32 2147483648, %v121_v36 }
  0x21   :  { %vm310_vm2 = vcmp.ge.s32.totalorder %v225_v27, 0  ;;  %vm129_vm3 = vcmp.ge.s32.totalorder %v226_v28, 0  ;;  %vm132_vm5 = vcmp.ge.s32.totalorder %v227_v32, 0  ;;  %v231_v53 = vxor.u32 2147483648, %v122_v39 }
  0x22   :  { %vm135_vm6 = vcmp.ge.s32.totalorder %v228_v33, 0  ;;  %v174_v40 = vsel %vm129_vm3, %v158_v24, 0.0  ;;  %v175_v43 = vsel %vm132_vm5, %v159_v29, 0.0  ;;  %v173_v48 = vsel %vm310_vm2, %v157_v38, 0.0 }
  0x23   :  { %v176_v44 = vsel %vm135_vm6, %v160_v34, 0.0  ;;  %v189_v45 = vrot.slane %v174_v40, 6  ;;  %v190_v49 = vrot.slane %v175_v43, 4  ;;  %v232_v54 = vxor.u32 2147483648, %v123_v46 }
  0x24   :  { %v191_v50 = vrot.slane %v176_v44, 2  ;;  %vm318_vm7 = vcmp.ge.s32.totalorder %v229_v41, 0  ;;  %vm141_vm8 = vcmp.ge.s32.totalorder %v230_v51, 0  ;;  %vm144_vm9 = vcmp.ge.s32.totalorder %v231_v53, 0 }
  0x25   :  { %v196_v52 = vsel %vm195_vm0, %v173_v48, %v189_v45  ;;  %vm147_vm10 = vcmp.ge.s32.totalorder %v232_v54, 0  ;;  %v178_v60 = vsel %vm141_vm8, %v162_v42, 0.0  ;;  %v179_v61 = vsel %vm144_vm9, %v163_v47, 0.0 }
  0x26   :  { %v198_v56 = vsel %vm197_vm1, %v190_v49, %v191_v50  ;;  %v180_v62 = vsel %vm147_vm10, %v164_v55, 0.0  ;;  %v192_v63 = vrot.slane %v178_v60, 6  ;;  %v177_v0 = vsel %vm318_vm7, %v161_v58, 0.0 }
  0x27   :  { %v200_v59 = vsel %vm199_vm4, %v196_v52, %v198_v56  ;;  %v193_v1 = vrot.slane %v179_v61, 4  ;;  %v194_v2 = vrot.slane %v180_v62, 2 }
  0x28   :  { %206 = vst [vmem:[#allocation7] sm:$0xff] %v200_v59  ;;  %v201_v3 = vsel %vm195_vm0, %v177_v0, %v192_v63 }
  0x29   :  { %v202_v4 = vsel %vm197_vm1, %v193_v1, %v194_v2 }
  0x2a   :  { %v203_v5 = vsel %vm199_vm4, %v201_v3, %v202_v4 }
  0x2b   :  { %207 = vst [vmem:[#allocation7 + $0x8] sm:$0xff] %v203_v5 }
  0x2c   :  { %218 = dma.vmem_to_hbm [thread:$0]  %s214_s1, 256, %s216_s20, [#allocation6]  }
  0x2d   :  { %285 = dma.done.wait [#allocation6], 256  }
  0x2e   :  { %286 = vsyncadd [#allocation6], 4294967040 }
  0x2f   :  { %223 = vsyncpa [#allocation5], 1 }
  0x30   :  { %224 = vsyncpa [#allocation6], 1 }

</bundles_post_ra>
